<compile_context>
chip_gen: v7x
topology: tpu7x:2x2x1
jax: 0.10.0
libtpu: 0.0.40
codegen_flags: <defaults>
</compile_context>

<pallas_src>
import jax
import jax.numpy as jnp
from jax.experimental import pallas as pl
from jax.experimental.pallas import tpu as pltpu

# Module hyper-parameters (deterministic, set in-script).
VMIN = 0.0
VMAX = 1.0
MARGIN_BOT = 0.1
MARGIN_TOP = 0.1

# Folded constants.
_Z = VMAX - VMIN + MARGIN_BOT + MARGIN_TOP
_INV_Z = 1.0 / _Z
_OFFSET = MARGIN_BOT - VMIN  # p01 = (p + _OFFSET) * _INV_Z

_LANES = 128
_SUBLANES = 8
_TILE_ROWS_MAX = 2048  # (2048, 128) f32 = 1 MiB per operand per block


def _round_up(x, m):
    return ((x + m - 1) // m) * m


def _loss_kernel(pred_ref, target_ref, out_ref):
    p = pred_ref[...]
    t = target_ref[...]

    p01 = (p + _OFFSET) * _INV_Z
    t01 = (t + _OFFSET) * _INV_Z

    # nn.BCELoss clamps each log term to >= -100 before combining.
    log_p = jnp.maximum(jnp.log(p01), -100.0)
    log_1mp = jnp.maximum(jnp.log(1.0 - p01), -100.0)
    bce_z = -(t01 * log_p + (1.0 - t01) * log_1mp) * _Z

    clip_top = jnp.logical_and(t >= VMAX, p >= VMAX)
    out_ref[...] = jnp.where(clip_top, 0.0, bce_z)


def regression_log_loss_with_margin(pred, target):
    """pred, target: float arrays of identical shape (e.g. NCHW). Returns f32."""
    assert pred.shape == target.shape
    orig_shape = pred.shape
    n = pred.size

    flat_p = pred.reshape(-1).astype(jnp.float32)
    flat_t = target.reshape(-1).astype(jnp.float32)

    # Lane-dense 2D slab: rows of 128 lanes, rows padded to a sublane-aligned
    # tile that is large enough to hide per-step pipeline overhead.
    rows = -(-n // _LANES)
    tile_rows = min(_TILE_ROWS_MAX, _round_up(rows, _SUBLANES))
    padded_rows = _round_up(rows, tile_rows)
    padded_n = padded_rows * _LANES

    if padded_n != n:
        # Pad with a value strictly inside (vmin, vmax) so log() stays finite.
        pad_val = 0.5 * (VMIN + VMAX)
        pad = jnp.full((padded_n - n,), pad_val, dtype=jnp.float32)
        flat_p = jnp.concatenate([flat_p, pad])
        flat_t = jnp.concatenate([flat_t, pad])

    pred2d = flat_p.reshape(padded_rows, _LANES)
    target2d = flat_t.reshape(padded_rows, _LANES)

    grid = (padded_rows // tile_rows,)

    out2d = pl.pallas_call(
        _loss_kernel,
        out_shape=jax.ShapeDtypeStruct((padded_rows, _LANES), jnp.float32),
        grid_spec=pltpu.PrefetchScalarGridSpec(
            num_scalar_prefetch=0,
            grid=grid,
            in_specs=[
                pl.BlockSpec((tile_rows, _LANES), lambda i: (i, 0)),
                pl.BlockSpec((tile_rows, _LANES), lambda i: (i, 0)),
            ],
            out_specs=pl.BlockSpec((tile_rows, _LANES), lambda i: (i, 0)),
        ),
        compiler_params=pltpu.CompilerParams(
            dimension_semantics=("parallel",),
            vmem_limit_bytes=32 * 1024 * 1024,
        ),
    )(pred2d, target2d)

    return out2d.reshape(-1)[:n].reshape(orig_shape)


def _reference(pred, target):
    # Pure-JAX reference mirroring the PyTorch module exactly.
    a, b = MARGIN_BOT, MARGIN_TOP
    z = VMAX - VMIN + a + b
    p01 = (pred - VMIN + a) / z
    t01 = (target - VMIN + a) / z
    log_p = jnp.maximum(jnp.log(p01), -100.0)
    log_1mp = jnp.maximum(jnp.log(1.0 - p01), -100.0)
    bce = -(t01 * log_p + (1.0 - t01) * log_1mp)
    mask = 1.0 - ((target >= VMAX) & (pred >= VMAX)).astype(jnp.float32)
    return bce * z * mask


if __name__ == "__main__":
    key = jax.random.PRNGKey(0)
    kp, kt, kp2, kt2 = jax.random.split(key, 4)

    # Test 1: NCHW inputs whose element count is already a multiple of 128.
    shape = (2, 4, 16, 16)
    pred = jax.random.uniform(kp, shape, dtype=jnp.float32,
                              minval=VMIN, maxval=VMAX)
    target = jax.random.uniform(kt, shape, dtype=jnp.float32,
                                minval=VMIN, maxval=VMAX)
    # Force a few elements onto the clip-top mask path.
    pred = pred.at[0, 0, 0, :4].set(VMAX)
    target = target.at[0, 0, 0, :4].set(VMAX)

    out = regression_log_loss_with_margin(pred, target)
    jax.block_until_ready(out)
    ref = _reference(pred, target)
    assert out.shape == shape
    assert jnp.allclose(out, ref, atol=1e-5, rtol=1e-5), "mismatch vs reference (test 1)"

    # Test 2: ragged element count -> exercises the padding path.
    shape2 = (3, 5, 7, 11)
    pred2 = jax.random.uniform(kp2, shape2, dtype=jnp.float32,
                               minval=VMIN, maxval=VMAX)
    target2 = jax.random.uniform(kt2, shape2, dtype=jnp.float32,
                                 minval=VMIN, maxval=VMAX)
    out2 = regression_log_loss_with_margin(pred2, target2)
    jax.block_until_ready(out2)
    ref2 = _reference(pred2, target2)
    assert out2.shape == shape2
    assert jnp.allclose(out2, ref2, atol=1e-5, rtol=1e-5), "mismatch vs reference (test 2)"

    print("KERNEL_OK")
</pallas_src>

<mosaic_0001>
module attributes {stable_mosaic.version = 11 : i64} {
  func.func @_loss_kernel(%arg0: i32, %arg1: memref<16x128xf32, #tpu.memory_space<vmem>>, %arg2: memref<16x128xf32, #tpu.memory_space<vmem>>, %arg3: memref<16x128xf32, #tpu.memory_space<vmem>>) attributes {dimension_semantics = [#tpu.dimension_semantics<parallel>], iteration_bounds = array<i64: 1>, scalar_prefetch = 0 : i64, scratch_operands = 0 : i64, tpu.core_type = #tpu.core_type<tc>, window_params = [{transform_indices = @transform_0, window_bounds = array<i64: 16, 128>}, {transform_indices = @transform_1, window_bounds = array<i64: 16, 128>}, {transform_indices = @transform_2, window_bounds = array<i64: 16, 128>}]} {
    %c0 = arith.constant 0 : index
    %c0_0 = arith.constant 0 : index
    %0 = vector.load %arg1[%c0, %c0_0] : memref<16x128xf32, #tpu.memory_space<vmem>>, vector<16x128xf32>
    %c0_1 = arith.constant 0 : index
    %c0_2 = arith.constant 0 : index
    %1 = vector.load %arg2[%c0_1, %c0_2] : memref<16x128xf32, #tpu.memory_space<vmem>>, vector<16x128xf32>
    %cst = arith.constant 1.000000e-01 : f32
    %2 = vector.broadcast %cst : f32 to vector<16x128xf32>
    %3 = arith.addf %0, %2 : vector<16x128xf32>
    %cst_3 = arith.constant 0.833333313 : f32
    %4 = vector.broadcast %cst_3 : f32 to vector<16x128xf32>
    %5 = arith.mulf %3, %4 : vector<16x128xf32>
    %cst_4 = arith.constant 1.000000e-01 : f32
    %6 = vector.broadcast %cst_4 : f32 to vector<16x128xf32>
    %7 = arith.addf %1, %6 : vector<16x128xf32>
    %cst_5 = arith.constant 0.833333313 : f32
    %8 = vector.broadcast %cst_5 : f32 to vector<16x128xf32>
    %9 = arith.mulf %7, %8 : vector<16x128xf32>
    %10 = math.log %5 : vector<16x128xf32>
    %cst_6 = arith.constant -1.000000e+02 : f32
    %11 = vector.broadcast %cst_6 : f32 to vector<16x128xf32>
    %12 = arith.maximumf %10, %11 : vector<16x128xf32>
    %cst_7 = arith.constant 1.000000e+00 : f32
    %13 = vector.broadcast %cst_7 : f32 to vector<16x128xf32>
    %14 = arith.subf %13, %5 : vector<16x128xf32>
    %15 = math.log %14 : vector<16x128xf32>
    %cst_8 = arith.constant -1.000000e+02 : f32
    %16 = vector.broadcast %cst_8 : f32 to vector<16x128xf32>
    %17 = arith.maximumf %15, %16 : vector<16x128xf32>
    %18 = arith.mulf %9, %12 : vector<16x128xf32>
    %cst_9 = arith.constant 1.000000e+00 : f32
    %19 = vector.broadcast %cst_9 : f32 to vector<16x128xf32>
    %20 = arith.subf %19, %9 : vector<16x128xf32>
    %21 = arith.mulf %20, %17 : vector<16x128xf32>
    %22 = arith.addf %18, %21 : vector<16x128xf32>
    %cst_10 = arith.constant 0.000000e+00 : f32
    %23 = vector.broadcast %cst_10 : f32 to vector<16x128xf32>
    %24 = arith.subf %23, %22 : vector<16x128xf32>
    %cst_11 = arith.constant 1.200000e+00 : f32
    %25 = vector.broadcast %cst_11 : f32 to vector<16x128xf32>
    %26 = arith.mulf %24, %25 : vector<16x128xf32>
    %cst_12 = arith.constant 1.000000e+00 : f32
    %27 = vector.broadcast %cst_12 : f32 to vector<16x128xf32>
    %28 = arith.cmpf oge, %1, %27 : vector<16x128xf32>
    %cst_13 = arith.constant 1.000000e+00 : f32
    %29 = vector.broadcast %cst_13 : f32 to vector<16x128xf32>
    %30 = arith.cmpf oge, %0, %29 : vector<16x128xf32>
    %31 = arith.andi %28, %30 : vector<16x128xi1>
    %cst_14 = arith.constant 0.000000e+00 : f32
    %32 = vector.broadcast %cst_14 : f32 to vector<16x128xf32>
    %33 = arith.select %31, %32, %26 : vector<16x128xi1>, vector<16x128xf32>
    %c0_15 = arith.constant 0 : index
    %c0_16 = arith.constant 0 : index
    %34 = vector.load %arg3[%c0_15, %c0_16] : memref<16x128xf32, #tpu.memory_space<vmem>>, vector<16x128xf32>
    tpu.vector_store %arg3[%c0_15, %c0_16], %33 {strides = array<i32>} : memref<16x128xf32, #tpu.memory_space<vmem>>, vector<16x128xf32>,
    return
  }
  func.func @transform_0(%arg0: i32) -> (i32, i32) {
    %c0_i32 = arith.constant 0 : i32
    %c0_i32_0 = arith.constant 0 : i32
    return %arg0, %c0_i32 : i32, i32
  }
  func.func @transform_1(%arg0: i32) -> (i32, i32) {
    %c0_i32 = arith.constant 0 : i32
    %c0_i32_0 = arith.constant 0 : i32
    return %arg0, %c0_i32 : i32, i32
  }
  func.func @transform_2(%arg0: i32) -> (i32, i32) {
    %c0_i32 = arith.constant 0 : i32
    %c0_i32_0 = arith.constant 0 : i32
    return %arg0, %c0_i32 : i32, i32
  }
}

</mosaic_0001>

<bundles_post_ra>
// kernel: tpu_custom_call.1
= control target key start
LH: loop header
LB: loop body
LE: loop exit
PB: predicated region body
PF: predicated region fallthrough
CT: control target
= control target key end

     0   :  { %7 = vsyncpa [#allocation3], 0  ;;  %s256_s0 = inlined_call_operand.hbm [shape: f32[16,128], index: 0, kind: input, shape index: {}]   ;;  %s257_s1 = inlined_call_operand.hbm [shape: f32[16,128], index: 1, kind: input, shape index: {}]   ;;  %s258_s2 = inlined_call_operand.hbm [shape: f32[16,128], index: 2, kind: output, shape index: {}]  }
   0x1   :  { %8 = vsyncpa [#allocation6], 0 }
   0x2   :  { %9 = vsyncpa [#allocation4], 0  ;;  %s191_s9 = smov [#allocation2]   ;;  %s119_s13 = scalar_lea.hbm %s256_s0, 256 }
   0x3   :  { %s15_s10 = sshll.u32 %s191_s9, 4  ;;  %p120_p0 = scmp.ne.s32.totalorder %s256_s0, %s119_s13  ;;  %s16_s10 = int_to_ptr.vmem [resolvable:$true] %s15_s10 }
   0x4   :  { %p123_p1 = scmp.lt.u32.totalorder %s119_s13, %s256_s0 }
   0x6   :  { %p125_p2 = pnand %p123_p1, %p120_p0 }
   0x8   :  { %128 = shalt.err (!%p125_p2)
}
   0x9   :  { %s129_s18 = scalar_lea.vmem %s16_s10, 256  ;;  %p134_p4 = scmp.lt.s32.totalorder %s16_s10, %s16_s10 }
   0xa   :  { %p130_p3 = scmp.ne.s32.totalorder %s16_s10, %s129_s18  ;;  %p135_p5 = scmp.lt.s32.totalorder %s129_s18, %s129_s18 }
   0xc   :  { %p136_p6 = por %p135_p5, %p134_p4 }
   0xe   :  { %p137_p7 = pnand %p136_p6, %p130_p3 }
  0x10   :  { %140 = shalt.err (!%p137_p7)
}
  0x11   :  { %s192_s19 = smov 128   ;;  %s193_s20 = smov 8  }
  0x12   :  { %21 = dma.hbm_to_vmem [thread:$0]  %s256_s0, 256, %s16_s10, [#allocation3], %s192_s19, %s192_s19, %s193_s20  }
  0x13   :  { %s194_s23 = smov [#allocation5]   ;;  %s141_s27 = scalar_lea.hbm %s257_s1, 256 }
  0x14   :  { %s27_s24 = sshll.u32 %s194_s23, 4  ;;  %p142_p8 = scmp.ne.s32.totalorder %s257_s1, %s141_s27  ;;  %s28_s24 = int_to_ptr.vmem [resolvable:$true] %s27_s24 }
  0x15   :  { %p145_p9 = scmp.lt.u32.totalorder %s141_s27, %s257_s1 }
  0x17   :  { %p147_p10 = pnand %p145_p9, %p142_p8 }
  0x19   :  { %150 = shalt.err (!%p147_p10)
}
  0x1a   :  { %s151_s4 = scalar_lea.vmem %s28_s24, 256  ;;  %p156_p12 = scmp.lt.s32.totalorder %s28_s24, %s28_s24 }
  0x1b   :  { %p152_p11 = scmp.ne.s32.totalorder %s28_s24, %s151_s4  ;;  %p157_p13 = scmp.lt.s32.totalorder %s151_s4, %s151_s4 }
  0x1d   :  { %p158_p0 = por %p157_p13, %p156_p12 }
  0x1f   :  { %p159_p1 = pnand %p158_p0, %p152_p11 }
  0x21   :  { %162 = shalt.err (!%p159_p1)
}
  0x22   :  { %33 = dma.hbm_to_vmem [thread:$0]  %s257_s1, 256, %s28_s24, [#allocation6], %s192_s19, %s192_s19, %s193_s20  }
  0x23   :  { %185 = dma.done.wait [#allocation3], 256  }
  0x24   :  { %186 = vsyncadd [#allocation3], 4294967040 }
  0x25   :  { %187 = dma.done.wait [#allocation6], 256  }
  0x26   :  { %188 = vsyncadd [#allocation6], 4294967040  ;;  %v40_v0 = vld [vmem:[#allocation2] sm:$0xff]  ;;  %v41_v1 = vld [vmem:[#allocation2 + $0x8] sm:$0xff]  ;;  %s195_s1 = smov [#allocation7]  }
  0x27   :  { %v44_v2 = vadd.f32 0.1, %v40_v0  ;;  %v45_v3 = vadd.f32 0.1, %v41_v1  ;;  %v42_v8 = vld [vmem:[#allocation5] sm:$0xff]  ;;  %v43_v9 = vld [vmem:[#allocation5 + $0x8] sm:$0xff] }
  0x28   :  { %v48_v10 = vadd.f32 0.1, %v42_v8  ;;  %v49_v11 = vadd.f32 0.1, %v43_v9  ;;  %vm78_vm0 = vcmp.ge.f32.partialorder %v42_v8, 1.0  ;;  %vm80_vm1 = vcmp.ge.f32.partialorder %v40_v0, 1.0 }
  0x29   :  { %v46_v4 = vmul.f32 0.8333333, %v44_v2  ;;  %v47_v5 = vmul.f32 0.8333333, %v45_v3  ;;  %vm79_vm2 = vcmp.ge.f32.partialorder %v43_v9, 1.0  ;;  %vm81_vm3 = vcmp.ge.f32.partialorder %v41_v1, 1.0  ;;  %vm82_vm4 = vmand %vm78_vm0, %vm80_vm1 }
  0x2a   :  { %v50_v12 = vmul.f32 0.8333333, %v48_v10  ;;  %v51_v14 = vmul.f32 0.8333333, %v49_v11  ;;  %s93_s6 = sshll.u32 %s195_s1, 4  ;;  %vm83_vm5 = vmand %vm79_vm2, %vm81_vm3  ;;  %s94_s6 = int_to_ptr.vmem [resolvable:$true] %s93_s6 }
  0x2b   :  { %111 = vlog2.f32 %v46_v4  ;;  %v58_v6 = vsub.f32 1.0, %v46_v4  ;;  %v59_v7 = vsub.f32 1.0, %v47_v5  ;;  %s163_s7 = scalar_lea.vmem %s94_s6, 256  ;;  %p168_p3 = scmp.lt.s32.totalorder %s94_s6, %s94_s6 }
  0x2c   :  { %113 = vlog2.f32 %v47_v5  ;;  %v68_v22 = vsub.f32 1.0, %v50_v12  ;;  %v69_v25 = vsub.f32 1.0, %v51_v14  ;;  %p164_p2 = scmp.ne.s32.totalorder %s94_s6, %s163_s7  ;;  %p169_p4 = scmp.lt.s32.totalorder %s163_s7, %s163_s7 }
  0x2d   :  { %115 = vlog2.f32 %v58_v6 }
  0x2e   :  { %117 = vlog2.f32 %v59_v7  ;;  %p170_p5 = por %p169_p4, %p168_p3 }
  0x30   :  { %p171_p6 = pnand %p170_p5, %p164_p2 }
  0x35   :  { %v112_v13 = vpop.eup %111 }
  0x36   :  { %v114_v15 = vpop.eup %113  ;;  %v53_v16 = vmul.f32 0.6931472, %v112_v13 }
  0x37   :  { %v116_v17 = vpop.eup %115  ;;  %v55_v18 = vmul.f32 0.6931472, %v114_v15 }
  0x38   :  { %v118_v19 = vpop.eup %117  ;;  %v56_v20 = vmax.f32 %v53_v16, -100.0  ;;  %v61_v21 = vmul.f32 0.6931472, %v116_v17 }
  0x39   :  { %v57_v23 = vmax.f32 %v55_v18, -100.0  ;;  %v63_v24 = vmul.f32 0.6931472, %v118_v19 }
  0x3a   :  { %v64_v26 = vmax.f32 %v61_v21, -100.0  ;;  %v66_v27 = vmul.f32 %v56_v20, %v50_v12 }
  0x3b   :  { %v65_v28 = vmax.f32 %v63_v24, -100.0  ;;  %v67_v29 = vmul.f32 %v57_v23, %v51_v14 }
  0x3c   :  { %v70_v30 = vmul.f32 %v68_v22, %v64_v26 }
  0x3d   :  { %v71_v31 = vmul.f32 %v69_v25, %v65_v28 }
  0x3e   :  { %v72_v32 = vadd.f32 %v70_v30, %v66_v27 }
  0x3f   :  { %v73_v33 = vadd.f32 %v71_v31, %v67_v29 }
  0x40   :  { %v74_v34 = vsub.f32 0.0, %v72_v32 }
  0x41   :  { %v75_v35 = vsub.f32 0.0, %v73_v33 }
  0x42   :  { %v76_v36 = vmul.f32 1.2, %v74_v34 }
  0x43   :  { %v77_v37 = vmul.f32 1.2, %v75_v35 }
  0x44   :  { %v84_v38 = vsel %vm82_vm4, 0.0, %v76_v36 }
  0x45   :  { %86 = vst [vmem:[#allocation7] sm:$0xff] %v84_v38  ;;  %v85_v39 = vsel %vm83_vm5, 0.0, %v77_v37 }
  0x46   :  { %87 = vst [vmem:[#allocation7 + $0x8] sm:$0xff] %v85_v39 }
  0x47   :  { %174 = shalt.err (!%p171_p6)
}
  0x48   :  { %s175_s10 = scalar_lea.hbm %s258_s2, 256 }
  0x49   :  { %p176_p7 = scmp.ne.s32.totalorder %s258_s2, %s175_s10  ;;  %p179_p8 = scmp.lt.u32.totalorder %s175_s10, %s258_s2 }
  0x4b   :  { %p181_p9 = pnand %p179_p8, %p176_p7 }
  0x4d   :  { %184 = shalt.err (!%p181_p9)
}
  0x4e   :  { %99 = dma.vmem_to_hbm [thread:$0]  %s94_s6, 256, %s258_s2, [#allocation4], %s192_s19, %s192_s19, %s193_s20  }
  0x4f   :  { %189 = dma.done.wait [#allocation4], 256  }
  0x50   :  { %190 = vsyncadd [#allocation4], 4294967040 }
  0x51   :  { %103 = vsyncpa [#allocation3], 1 }
  0x52   :  { %104 = vsyncpa [#allocation6], 1 }
  0x53   :  { %105 = vsyncpa [#allocation4], 1 }

</bundles_post_ra>
